<compile_context>
chip_gen: v6e
topology: v6e:2x2x1
jax: 0.10.0
libtpu: 0.0.40
codegen_flags: <defaults>
</compile_context>

<pallas_src>
import jax
import jax.numpy as jnp
from jax.experimental import pallas as pl
from jax.experimental.pallas import tpu as pltpu

EPS = 1e-5


def _const_map(nd):
    # index_map that always selects block (0, ..., 0) regardless of grid pos
    return lambda b, l: (0,) * nd


def _round_up(v, m):
    return ((v + m - 1) // m) * m


def _pick_tile(L, max_tile=128):
    """Largest sequence tile <= max_tile that keeps BlockSpec constraints."""
    if L <= max_tile:
        return L
    t = (max_tile // 8) * 8
    while t >= 8:
        if L % t == 0:
            return t
        t -= 8
    return L  # fallback: single tile covering the whole sequence


def make_kernel(TL, D, E, N, R, DCONV, O_pad, cdt):
    f32 = jnp.float32

    def silu(v):
        return v * jax.nn.sigmoid(v)

    def softplus(v):
        # matches torch.nn.functional.softplus (threshold=20)
        return jnp.where(v > 20.0, v, jnp.log1p(jnp.exp(jnp.minimum(v, 20.0))))

    def layernorm(v, w, b):
        mu = jnp.mean(v, axis=-1, keepdims=True)
        c = v - mu
        var = jnp.mean(c * c, axis=-1, keepdims=True)
        return c * jax.lax.rsqrt(var + EPS) * w + b

    def kernel(x_ref, nw_ref, nb_ref, inxw_ref, inzw_ref, convw_ref, convb_ref,
               xdtw_ref, xbw_ref, xcw_ref, dtw_ref, dtb_ref, AT_ref, Dp_ref,
               outw_ref, pw_ref, pb_ref, skip_ref, o_ref,
               h_ref, xpad_ref, dlt_ref, dx_ref, bm_ref, cm_ref, ysc_ref):
        lt = pl.program_id(1)

        nw = nw_ref[...]                                    # (1, D) f32
        nb = nb_ref[...]                                    # (1, D) f32
        x = x_ref[...]                                      # (TL, D) f32

        # ---- first LayerNorm ------------------------------------------------
        xn = layernorm(x, nw, nb).astype(cdt)

        # ---- Mamba input projection (split weights, bf16 MXU, f32 acc) ------
        x_in = jnp.dot(xn, inxw_ref[...], preferred_element_type=f32)  # (TL, E)
        z = jnp.dot(xn, inzw_ref[...], preferred_element_type=f32)     # (TL, E)

        # ---- causal depthwise conv1d with carried tail (no concat) ----------
        @pl.when(lt == 0)
        def _init_state():
            xpad_ref[0:DCONV - 1, :] = jnp.zeros((DCONV - 1, E), f32)
            h_ref[...] = jnp.zeros((N, E), f32)

        @pl.when(lt > 0)
        def _carry_tail():
            xpad_ref[0:DCONV - 1, :] = xpad_ref[TL:TL + DCONV - 1, :]

        xpad_ref[DCONV - 1:, :] = x_in

        convw = convw_ref[...]                              # (DCONV, E) f32
        acc = jnp.zeros((TL, E), f32)
        for k in range(DCONV):                              # DCONV tiny & static
            acc = acc + convw[k:k + 1, :] * xpad_ref[k:k + TL, :]
        xc = silu(acc + convb_ref[...])                     # (TL, E) f32
        xcb = xc.astype(cdt)

        # ---- dt / B / C projections (lane-aligned separate weights) ---------
        dt_in = jnp.dot(xcb, xdtw_ref[...], preferred_element_type=f32)   # (TL, R)
        delta = softplus(
            jnp.dot(dt_in.astype(cdt), dtw_ref[...],
                    preferred_element_type=f32) + dtb_ref[...])           # (TL, E)
        dlt_ref[...] = delta
        dx_ref[...] = delta * xc
        bm_ref[...] = jnp.dot(xcb, xbw_ref[...], preferred_element_type=f32)  # (TL, N)
        cm_ref[...] = jnp.dot(xcb, xcw_ref[...], preferred_element_type=f32)  # (TL, N)

        # ---- selective scan: fori_loop, state (N, E) with E on lanes --------
        AT = AT_ref[...]                                    # (N, E) f32
        eyeN = jnp.eye(N, dtype=f32)

        def step(t, h):
            d_row = dlt_ref[pl.ds(t, 1), :]                 # (1, E)
            dx_row = dx_ref[pl.ds(t, 1), :]                 # (1, E)
            b_row = bm_ref[pl.ds(t, 1), :]                  # (1, N)
            c_row = cm_ref[pl.ds(t, 1), :]                  # (1, N)
            dA = jnp.exp(d_row * AT)                        # (N, E) f32
            # outer(B_t, dx_t) as a tiny MXU matmul: diag(B_t) @ bcast(dx_t)
            dBx = jnp.dot(b_row * eyeN,
                          jnp.broadcast_to(dx_row, (N, E)),
                          preferred_element_type=f32)       # (N, E)
            h = dA * h + dBx
            ysc_ref[pl.ds(t, 1), :] = jnp.dot(c_row, h,
                                              preferred_element_type=f32)  # (1, E)
            return h

        h_ref[...] = jax.lax.fori_loop(0, TL, step, h_ref[...])

        # ---- D skip, gate, output projection, scaled residual ---------------
        y = ysc_ref[...] + xc * Dp_ref[...]                 # (TL, E)
        y = y * silu(z)
        out = jnp.dot(y.astype(cdt), outw_ref[...], preferred_element_type=f32)  # (TL, D)
        xm = out + skip_ref[0] * x

        # ---- second LayerNorm (shared params, as in the PyTorch module) -----
        xm = layernorm(xm, nw, nb).astype(cdt)
        o_ref[...] = jnp.dot(xm, pw_ref[...], preferred_element_type=f32) + pb_ref[...]

    return kernel


def mamba_layer_pallas(x, p, dims, *, max_tile=128, compute_dtype=jnp.bfloat16):
    B, L, D = x.shape
    E, N, R, DCONV = dims
    O = p["proj_w"].shape[1]
    O_pad = _round_up(O, 128)
    TL = _pick_tile(L, max_tile)
    assert L % TL == 0
    LT = L // TL

    f32 = jnp.float32
    cd = compute_dtype

    # ---- split / pre-transpose / cast weights in the wrapper ----------------
    in_x_w = p["in_proj_w"][:, :E].astype(cd)               # (D, E)
    in_z_w = p["in_proj_w"][:, E:].astype(cd)               # (D, E)
    xdt_w = p["x_proj_w"][:, :R].astype(cd)                 # (E, R)
    xb_w = p["x_proj_w"][:, R:R + N].astype(cd)             # (E, N)
    xc_w = p["x_proj_w"][:, R + N:].astype(cd)              # (E, N)
    dtp_w = p["dt_proj_w"].astype(cd)                       # (R, E)
    out_w = p["out_proj_w"].astype(cd)                      # (E, D)
    AT = jnp.transpose(p["A"]).astype(f32)                  # (N, E), E on lanes

    if O_pad == O:
        proj_w = p["proj_w"].astype(cd)
        proj_b = p["proj_b"].astype(f32)
    else:
        proj_w = jnp.zeros((D, O_pad), f32).at[:, :O].set(p["proj_w"]).astype(cd)
        proj_b = jnp.zeros((1, O_pad), f32).at[:, :O].set(p["proj_b"])

    skip = p["skip_scale"].reshape((1,)).astype(f32)        # scalar -> SMEM

    weights = [p["norm_w"], p["norm_b"], in_x_w, in_z_w, p["conv_w"], p["conv_b"],
               xdt_w, xb_w, xc_w, dtp_w, p["dt_proj_b"], AT, p["D_param"],
               out_w, proj_w, proj_b]

    in_specs = [pl.BlockSpec((None, TL, D), lambda b, l: (b, l, 0))]
    in_specs += [pl.BlockSpec(w.shape, _const_map(w.ndim)) for w in weights]
    in_specs += [pl.BlockSpec(memory_space=pltpu.MemorySpace.SMEM)]   # skip_scale

    scratch = [
        pltpu.VMEM((N, E), f32),                  # h      : carried SSM state
        pltpu.VMEM((TL + DCONV - 1, E), f32),     # xpad   : conv buffer + tail carry
        pltpu.VMEM((TL, E), f32),                 # delta
        pltpu.VMEM((TL, E), f32),                 # delta * xc
        pltpu.VMEM((TL, N), f32),                 # B
        pltpu.VMEM((TL, N), f32),                 # C
        pltpu.VMEM((TL, E), f32),                 # scan output rows
    ]

    kern = make_kernel(TL, D, E, N, R, DCONV, O_pad, cd)
    out = pl.pallas_call(
        kern,
        out_shape=jax.ShapeDtypeStruct((B, L, O_pad), f32),
        grid=(B, LT),
        in_specs=in_specs,
        out_specs=pl.BlockSpec((None, TL, O_pad), lambda b, l: (b, l, 0)),
        scratch_shapes=scratch,
        compiler_params=pltpu.CompilerParams(
            dimension_semantics=("parallel", "arbitrary"),
            vmem_limit_bytes=48 * 1024 * 1024),
    )(x, *weights, skip)
    return out[..., :O]


def init_params(key, D, O, N=16, DCONV=4, expand=2):
    E = expand * D
    R = max(1, -(-D // 16))  # dt_rank = ceil(D / 16)
    ks = jax.random.split(key, 9)

    def unif(k, shape, scale):
        return jax.random.uniform(k, shape, jnp.float32, -scale, scale)

    params = dict(
        norm_w=jnp.ones((1, D), jnp.float32),
        norm_b=jnp.zeros((1, D), jnp.float32),
        in_proj_w=unif(ks[0], (D, 2 * E), 1.0 / (D ** 0.5)),   # pre-transposed (in, out)
        conv_w=unif(ks[1], (DCONV, E), 1.0 / (DCONV ** 0.5)),  # (tap, channel)
        conv_b=unif(ks[2], (1, E), 1.0 / (DCONV ** 0.5)),
        x_proj_w=unif(ks[3], (E, R + 2 * N), 1.0 / (E ** 0.5)),
        dt_proj_w=unif(ks[4], (R, E), 1.0 / (R ** 0.5)),
        dt_proj_b=unif(ks[5], (1, E), 0.1),
        A=-jnp.broadcast_to(jnp.arange(1, N + 1, dtype=jnp.float32)[None, :], (E, N)),
        D_param=jnp.ones((1, E), jnp.float32),
        out_proj_w=unif(ks[6], (E, D), 1.0 / (E ** 0.5)),
        proj_w=unif(ks[7], (D, O), 1.0 / (D ** 0.5)),
        proj_b=unif(ks[8], (1, O), 1.0 / (D ** 0.5)),
        skip_scale=jnp.ones((1, 1), jnp.float32),
    )
    return params, (E, N, R, DCONV)


def mamba_layer_ref(x, p, dims):
    """Pure-JAX f32 reference of the same forward pass (correctness check)."""
    E, N, R, DCONV = dims

    def ln(v):
        mu = v.mean(-1, keepdims=True)
        c = v - mu
        var = (c * c).mean(-1, keepdims=True)
        return c / jnp.sqrt(var + EPS) * p["norm_w"] + p["norm_b"]

    def softplus(v):
        return jnp.where(v > 20.0, v, jnp.log1p(jnp.exp(jnp.minimum(v, 20.0))))

    def silu(v):
        return v * jax.nn.sigmoid(v)

    def single(xs):  # (L, D)
        L = xs.shape[0]
        xn = ln(xs)
        xz = xn @ p["in_proj_w"]
        xi, z = xz[:, :E], xz[:, E:]
        xp = jnp.concatenate([jnp.zeros((DCONV - 1, E), jnp.float32), xi], 0)
        xc = sum(p["conv_w"][k][None, :] * xp[k:k + L] for k in range(DCONV)) + p["conv_b"]
        xc = silu(xc)
        xdb = xc @ p["x_proj_w"]
        dt_in, Bm, Cm = xdb[:, :R], xdb[:, R:R + N], xdb[:, R + N:]
        delta = softplus(dt_in @ p["dt_proj_w"] + p["dt_proj_b"])
        dA = jnp.exp(delta[:, :, None] * p["A"][None])
        dBx = delta[:, :, None] * Bm[:, None, :] * xc[:, :, None]
        h = jnp.zeros((E, N), jnp.float32)
        ys = []
        for t in range(L):
            h = dA[t] * h + dBx[t]
            ys.append(jnp.sum(h * Cm[t][None, :], -1))
        y = jnp.stack(ys, 0) + xc * p["D_param"]
        y = y * silu(z)
        out = y @ p["out_proj_w"]
        xm = ln(out + p["skip_scale"][0, 0] * xs)
        return xm @ p["proj_w"] + p["proj_b"]

    return jax.vmap(single)(x)


if __name__ == "__main__":
    # small shapes; L=16 with max_tile=8 exercises the carried conv-tail / SSM
    # state across sequence tiles (grid = (2 batches, 2 seq tiles)).
    B, L, D, O = 2, 16, 16, 16
    key = jax.random.PRNGKey(0)
    kx, kp = jax.random.split(key)
    x = jax.random.normal(kx, (B, L, D), jnp.float32)
    params, dims = init_params(kp, D, O)

    out = mamba_layer_pallas(x, params, dims, max_tile=8)
    out = jax.block_until_ready(out)

    ref = mamba_layer_ref(x, params, dims)
    assert out.shape == (B, L, O)
    assert bool(jnp.all(jnp.isfinite(out)))
    max_err = float(jnp.max(jnp.abs(out - ref)))
    # bf16 MXU operands vs f32 reference -> loose-ish but tight-enough bound
    assert max_err < 5e-2, f"max abs error vs reference: {max_err}"
    print("KERNEL_OK")
</pallas_src>

<mosaic_0001>
module attributes {stable_mosaic.version = 11 : i64} {
  func.func @kernel(%arg0: i32, %arg1: i32, %arg2: memref<1x8x16xf32, #tpu.memory_space<vmem>>, %arg3: memref<1x16xf32, #tpu.memory_space<vmem>>, %arg4: memref<1x16xf32, #tpu.memory_space<vmem>>, %arg5: memref<16x32xbf16, #tpu.memory_space<vmem>>, %arg6: memref<16x32xbf16, #tpu.memory_space<vmem>>, %arg7: memref<4x32xf32, #tpu.memory_space<vmem>>, %arg8: memref<1x32xf32, #tpu.memory_space<vmem>>, %arg9: memref<32x1xbf16, #tpu.memory_space<vmem>>, %arg10: memref<32x16xbf16, #tpu.memory_space<vmem>>, %arg11: memref<32x16xbf16, #tpu.memory_space<vmem>>, %arg12: memref<1x32xbf16, #tpu.memory_space<vmem>>, %arg13: memref<1x32xf32, #tpu.memory_space<vmem>>, %arg14: memref<16x32xf32, #tpu.memory_space<vmem>>, %arg15: memref<1x32xf32, #tpu.memory_space<vmem>>, %arg16: memref<32x16xbf16, #tpu.memory_space<vmem>>, %arg17: memref<16x128xbf16, #tpu.memory_space<vmem>>, %arg18: memref<1x128xf32, #tpu.memory_space<vmem>>, %arg19: memref<1xf32, #tpu.memory_space<smem>>, %arg20: memref<1x8x128xf32, #tpu.memory_space<vmem>>, %arg21: memref<16x32xf32, #tpu.memory_space<vmem>>, %arg22: memref<11x32xf32, #tpu.memory_space<vmem>>, %arg23: memref<8x32xf32, #tpu.memory_space<vmem>>, %arg24: memref<8x32xf32, #tpu.memory_space<vmem>>, %arg25: memref<8x16xf32, #tpu.memory_space<vmem>>, %arg26: memref<8x16xf32, #tpu.memory_space<vmem>>, %arg27: memref<8x32xf32, #tpu.memory_space<vmem>>) attributes {dimension_semantics = [#tpu.dimension_semantics<parallel>, #tpu.dimension_semantics<arbitrary>], iteration_bounds = array<i64: 2, 2>, scalar_prefetch = 0 : i64, scratch_operands = 7 : i64, tpu.core_type = #tpu.core_type<tc>, window_params = [{transform_indices = @transform_0, window_bounds = array<i64: 1, 8, 16>}, {pipeline_mode = #tpu.pipeline_mode<synchronous>, transform_indices = @transform_1, window_bounds = array<i64: 1, 16>}, {pipeline_mode = #tpu.pipeline_mode<synchronous>, transform_indices = @transform_2, window_bounds = array<i64: 1, 16>}, {pipeline_mode = #tpu.pipeline_mode<synchronous>, transform_indices = @transform_3, window_bounds = array<i64: 16, 32>}, {pipeline_mode = #tpu.pipeline_mode<synchronous>, transform_indices = @transform_4, window_bounds = array<i64: 16, 32>}, {pipeline_mode = #tpu.pipeline_mode<synchronous>, transform_indices = @transform_5, window_bounds = array<i64: 4, 32>}, {pipeline_mode = #tpu.pipeline_mode<synchronous>, transform_indices = @transform_6, window_bounds = array<i64: 1, 32>}, {pipeline_mode = #tpu.pipeline_mode<synchronous>, transform_indices = @transform_7, window_bounds = array<i64: 32, 1>}, {pipeline_mode = #tpu.pipeline_mode<synchronous>, transform_indices = @transform_8, window_bounds = array<i64: 32, 16>}, {pipeline_mode = #tpu.pipeline_mode<synchronous>, transform_indices = @transform_9, window_bounds = array<i64: 32, 16>}, {pipeline_mode = #tpu.pipeline_mode<synchronous>, transform_indices = @transform_10, window_bounds = array<i64: 1, 32>}, {pipeline_mode = #tpu.pipeline_mode<synchronous>, transform_indices = @transform_11, window_bounds = array<i64: 1, 32>}, {pipeline_mode = #tpu.pipeline_mode<synchronous>, transform_indices = @transform_12, window_bounds = array<i64: 16, 32>}, {pipeline_mode = #tpu.pipeline_mode<synchronous>, transform_indices = @transform_13, window_bounds = array<i64: 1, 32>}, {pipeline_mode = #tpu.pipeline_mode<synchronous>, transform_indices = @transform_14, window_bounds = array<i64: 32, 16>}, {pipeline_mode = #tpu.pipeline_mode<synchronous>, transform_indices = @transform_15, window_bounds = array<i64: 16, 128>}, {pipeline_mode = #tpu.pipeline_mode<synchronous>, transform_indices = @transform_16, window_bounds = array<i64: 1, 128>}, {transform_indices = @transform_17, window_bounds = array<i64: 1>}, {transform_indices = @transform_18, window_bounds = array<i64: 1, 8, 128>}]} {
    %c0 = arith.constant 0 : index
    %c0_0 = arith.constant 0 : index
    %0 = vector.load %arg3[%c0, %c0_0] : memref<1x16xf32, #tpu.memory_space<vmem>>, vector<1x16xf32>
    %c0_1 = arith.constant 0 : index
    %c0_2 = arith.constant 0 : index
    %1 = vector.load %arg4[%c0_1, %c0_2] : memref<1x16xf32, #tpu.memory_space<vmem>>, vector<1x16xf32>
    %c0_3 = arith.constant 0 : index
    %c0_4 = arith.constant 0 : index
    %c0_5 = arith.constant 0 : index
    %2 = vector.load %arg2[%c0_3, %c0_4, %c0_5] : memref<1x8x16xf32, #tpu.memory_space<vmem>>, vector<1x8x16xf32>
    %3 = vector.shape_cast %2 : vector<1x8x16xf32> to vector<8x16xf32>
    %cst = arith.constant dense<0.000000e+00> : vector<8xf32>
    %4 = vector.multi_reduction <add>, %3, %cst [1] : vector<8x16xf32> to vector<8xf32>
    %5 = vector.shape_cast %4 : vector<8xf32> to vector<8x1xf32>
    %cst_6 = arith.constant 1.600000e+01 : f32
    %6 = vector.broadcast %cst_6 : f32 to vector<8x1xf32>
    %7 = arith.divf %5, %6 : vector<8x1xf32>
    %8 = vector.broadcast %7 : vector<8x1xf32> to vector<8x16xf32>
    %9 = arith.subf %3, %8 : vector<8x16xf32>
    %10 = arith.mulf %9, %9 : vector<8x16xf32>
    %cst_7 = arith.constant dense<0.000000e+00> : vector<8xf32>
    %11 = vector.multi_reduction <add>, %10, %cst_7 [1] : vector<8x16xf32> to vector<8xf32>
    %12 = vector.shape_cast %11 : vector<8xf32> to vector<8x1xf32>
    %cst_8 = arith.constant 1.600000e+01 : f32
    %13 = vector.broadcast %cst_8 : f32 to vector<8x1xf32>
    %14 = arith.divf %12, %13 : vector<8x1xf32>
    %cst_9 = arith.constant 9.99999974E-6 : f32
    %15 = vector.broadcast %cst_9 : f32 to vector<8x1xf32>
    %16 = arith.addf %14, %15 : vector<8x1xf32>
    %17 = math.rsqrt %16 : vector<8x1xf32>
    %18 = vector.broadcast %17 : vector<8x1xf32> to vector<8x16xf32>
    %19 = arith.mulf %9, %18 : vector<8x16xf32>
    %20 = vector.broadcast %0 : vector<1x16xf32> to vector<8x16xf32>
    %21 = arith.mulf %19, %20 : vector<8x16xf32>
    %22 = vector.broadcast %1 : vector<1x16xf32> to vector<8x16xf32>
    %23 = arith.addf %21, %22 : vector<8x16xf32>
    %24 = arith.truncf %23 : vector<8x16xf32> to vector<8x16xbf16>
    %c0_10 = arith.constant 0 : index
    %c0_11 = arith.constant 0 : index
    %25 = vector.load %arg5[%c0_10, %c0_11] : memref<16x32xbf16, #tpu.memory_space<vmem>>, vector<16x32xbf16>
    %cst_12 = arith.constant dense<0.000000e+00> : vector<8x32xf32>
    %26 = tpu.matmul %24, %25, %cst_12 {dimension_numbers = #tpu.dot_dimension_numbers<[1], [0], [0], [1], [0, 0, 1, 1], [], []>} : vector<8x16xbf16>, vector<16x32xbf16>, vector<8x32xf32> -> vector<8x32xf32>
    %c0_13 = arith.constant 0 : index
    %c0_14 = arith.constant 0 : index
    %27 = vector.load %arg6[%c0_13, %c0_14] : memref<16x32xbf16, #tpu.memory_space<vmem>>, vector<16x32xbf16>
    %cst_15 = arith.constant dense<0.000000e+00> : vector<8x32xf32>
    %28 = tpu.matmul %24, %27, %cst_15 {dimension_numbers = #tpu.dot_dimension_numbers<[1], [0], [0], [1], [0, 0, 1, 1], [], []>} : vector<8x16xbf16>, vector<16x32xbf16>, vector<8x32xf32> -> vector<8x32xf32>
    %c0_i32 = arith.constant 0 : i32
    %29 = arith.cmpi eq, %arg1, %c0_i32 : i32
    %30 = arith.extui %29 : i1 to i32
    %c0_i32_16 = arith.constant 0 : i32
    %31 = arith.cmpi ne, %30, %c0_i32_16 : i32
    scf.if %31 {
      %cst_87 = arith.constant 0.000000e+00 : f32
      %152 = vector.broadcast %cst_87 : f32 to vector<3x32xf32>
      %c0_88 = arith.constant 0 : index
      %c0_89 = arith.constant 0 : index
      %153 = vector.load %arg22[%c0_88, %c0_89] : memref<11x32xf32, #tpu.memory_space<vmem>>, vector<3x32xf32>
      tpu.vector_store %arg22[%c0_88, %c0_89], %152 {strides = array<i32>} : memref<11x32xf32, #tpu.memory_space<vmem>>, vector<3x32xf32>,
      %cst_90 = arith.constant 0.000000e+00 : f32
      %154 = vector.broadcast %cst_90 : f32 to vector<16x32xf32>
      %c0_91 = arith.constant 0 : index
      %c0_92 = arith.constant 0 : index
      %155 = vector.load %arg21[%c0_91, %c0_92] : memref<16x32xf32, #tpu.memory_space<vmem>>, vector<16x32xf32>
      tpu.vector_store %arg21[%c0_91, %c0_92], %154 {strides = array<i32>} : memref<16x32xf32, #tpu.memory_space<vmem>>, vector<16x32xf32>,
    } else {
    }
    %c0_i32_17 = arith.constant 0 : i32
    %32 = arith.cmpi sgt, %arg1, %c0_i32_17 : i32
    %33 = arith.extui %32 : i1 to i32
    %c0_i32_18 = arith.constant 0 : i32
    %34 = arith.cmpi ne, %33, %c0_i32_18 : i32
    scf.if %34 {
      %c8 = arith.constant 8 : index
      %c0_87 = arith.constant 0 : index
      %152 = vector.load %arg22[%c8, %c0_87] : memref<11x32xf32, #tpu.memory_space<vmem>>, vector<3x32xf32>
      %c0_88 = arith.constant 0 : index
      %c0_89 = arith.constant 0 : index
      %153 = vector.load %arg22[%c0_88, %c0_89] : memref<11x32xf32, #tpu.memory_space<vmem>>, vector<3x32xf32>
      tpu.vector_store %arg22[%c0_88, %c0_89], %152 {strides = array<i32>} : memref<11x32xf32, #tpu.memory_space<vmem>>, vector<3x32xf32>,
    } else {
    }
    %c3 = arith.constant 3 : index
    %c0_19 = arith.constant 0 : index
    %35 = vector.load %arg22[%c3, %c0_19] : memref<11x32xf32, #tpu.memory_space<vmem>>, vector<8x32xf32>
    tpu.vector_store %arg22[%c3, %c0_19], %26 {strides = array<i32>} : memref<11x32xf32, #tpu.memory_space<vmem>>, vector<8x32xf32>,
    %c0_20 = arith.constant 0 : index
    %c0_21 = arith.constant 0 : index
    %36 = vector.load %arg7[%c0_20, %c0_21] : memref<4x32xf32, #tpu.memory_space<vmem>>, vector<4x32xf32>
    %cst_22 = arith.constant 0.000000e+00 : f32
    %37 = vector.broadcast %cst_22 : f32 to vector<8x32xf32>
    %38 = vector.extract_strided_slice %36 {offsets = [0, 0], sizes = [1, 32], strides = [1, 1]} : vector<4x32xf32> to vector<1x32xf32>
    %c0_23 = arith.constant 0 : index
    %c0_24 = arith.constant 0 : index
    %39 = vector.load %arg22[%c0_23, %c0_24] : memref<11x32xf32, #tpu.memory_space<vmem>>, vector<8x32xf32>
    %40 = vector.broadcast %38 : vector<1x32xf32> to vector<8x32xf32>
    %41 = arith.mulf %40, %39 : vector<8x32xf32>
    %42 = arith.addf %37, %41 : vector<8x32xf32>
    %43 = vector.extract_strided_slice %36 {offsets = [1, 0], sizes = [1, 32], strides = [1, 1]} : vector<4x32xf32> to vector<1x32xf32>
    %c1 = arith.constant 1 : index
    %c0_25 = arith.constant 0 : index
    %44 = vector.load %arg22[%c1, %c0_25] : memref<11x32xf32, #tpu.memory_space<vmem>>, vector<8x32xf32>
    %45 = vector.broadcast %43 : vector<1x32xf32> to vector<8x32xf32>
    %46 = arith.mulf %45, %44 : vector<8x32xf32>
    %47 = arith.addf %42, %46 : vector<8x32xf32>
    %48 = vector.extract_strided_slice %36 {offsets = [2, 0], sizes = [1, 32], strides = [1, 1]} : vector<4x32xf32> to vector<1x32xf32>
    %c2 = arith.constant 2 : index
    %c0_26 = arith.constant 0 : index
    %49 = vector.load %arg22[%c2, %c0_26] : memref<11x32xf32, #tpu.memory_space<vmem>>, vector<8x32xf32>
    %50 = vector.broadcast %48 : vector<1x32xf32> to vector<8x32xf32>
    %51 = arith.mulf %50, %49 : vector<8x32xf32>
    %52 = arith.addf %47, %51 : vector<8x32xf32>
    %53 = vector.extract_strided_slice %36 {offsets = [3, 0], sizes = [1, 32], strides = [1, 1]} : vector<4x32xf32> to vector<1x32xf32>
    %c3_27 = arith.constant 3 : index
    %c0_28 = arith.constant 0 : index
    %54 = vector.load %arg22[%c3_27, %c0_28] : memref<11x32xf32, #tpu.memory_space<vmem>>, vector<8x32xf32>
    %55 = vector.broadcast %53 : vector<1x32xf32> to vector<8x32xf32>
    %56 = arith.mulf %55, %54 : vector<8x32xf32>
    %57 = arith.addf %52, %56 : vector<8x32xf32>
    %c0_29 = arith.constant 0 : index
    %c0_30 = arith.constant 0 : index
    %58 = vector.load %arg8[%c0_29, %c0_30] : memref<1x32xf32, #tpu.memory_space<vmem>>, vector<1x32xf32>
    %59 = vector.broadcast %58 : vector<1x32xf32> to vector<8x32xf32>
    %60 = arith.addf %57, %59 : vector<8x32xf32>
    %61 = arith.negf %60 : vector<8x32xf32>
    %62 = math.exp %61 : vector<8x32xf32>
    %cst_31 = arith.constant 1.000000e+00 : f32
    %63 = vector.broadcast %cst_31 : f32 to vector<8x32xf32>
    %64 = arith.addf %63, %62 : vector<8x32xf32>
    %65 = arith.divf %63, %64 : vector<8x32xf32>
    %66 = arith.mulf %60, %65 : vector<8x32xf32>
    %67 = arith.truncf %66 : vector<8x32xf32> to vector<8x32xbf16>
    %c0_32 = arith.constant 0 : index
    %c0_33 = arith.constant 0 : index
    %68 = vector.load %arg9[%c0_32, %c0_33] : memref<32x1xbf16, #tpu.memory_space<vmem>>, vector<32x1xbf16>
    %cst_34 = arith.constant dense<0.000000e+00> : vector<8x1xf32>
    %69 = tpu.matmul %67, %68, %cst_34 {dimension_numbers = #tpu.dot_dimension_numbers<[1], [0], [0], [1], [0, 0, 1, 1], [], []>} : vector<8x32xbf16>, vector<32x1xbf16>, vector<8x1xf32> -> vector<8x1xf32>
    %70 = arith.truncf %69 : vector<8x1xf32> to vector<8x1xbf16>
    %c0_35 = arith.constant 0 : index
    %c0_36 = arith.constant 0 : index
    %71 = vector.load %arg12[%c0_35, %c0_36] : memref<1x32xbf16, #tpu.memory_space<vmem>>, vector<1x32xbf16>
    %cst_37 = arith.constant dense<0.000000e+00> : vector<8x32xf32>
    %72 = tpu.matmul %70, %71, %cst_37 {dimension_numbers = #tpu.dot_dimension_numbers<[1], [0], [0], [1], [0, 0, 1, 1], [], []>} : vector<8x1xbf16>, vector<1x32xbf16>, vector<8x32xf32> -> vector<8x32xf32>
    %c0_38 = arith.constant 0 : index
    %c0_39 = arith.constant 0 : index
    %73 = vector.load %arg13[%c0_38, %c0_39] : memref<1x32xf32, #tpu.memory_space<vmem>>, vector<1x32xf32>
    %74 = vector.broadcast %73 : vector<1x32xf32> to vector<8x32xf32>
    %75 = arith.addf %72, %74 : vector<8x32xf32>
    %cst_40 = arith.constant 2.000000e+01 : f32
    %76 = vector.broadcast %cst_40 : f32 to vector<8x32xf32>
    %77 = arith.cmpf ogt, %75, %76 : vector<8x32xf32>
    %cst_41 = arith.constant 2.000000e+01 : f32
    %78 = vector.broadcast %cst_41 : f32 to vector<8x32xf32>
    %79 = arith.minimumf %75, %78 : vector<8x32xf32>
    %80 = math.exp %79 : vector<8x32xf32>
    %81 = math.log1p %80 : vector<8x32xf32>
    %82 = arith.select %77, %75, %81 : vector<8x32xi1>, vector<8x32xf32>
    %c0_42 = arith.constant 0 : index
    %c0_43 = arith.constant 0 : index
    %83 = vector.load %arg23[%c0_42, %c0_43] : memref<8x32xf32, #tpu.memory_space<vmem>>, vector<8x32xf32>
    tpu.vector_store %arg23[%c0_42, %c0_43], %82 {strides = array<i32>} : memref<8x32xf32, #tpu.memory_space<vmem>>, vector<8x32xf32>,
    %84 = arith.mulf %82, %66 : vector<8x32xf32>
    %c0_44 = arith.constant 0 : index
    %c0_45 = arith.constant 0 : index
    %85 = vector.load %arg24[%c0_44, %c0_45] : memref<8x32xf32, #tpu.memory_space<vmem>>, vector<8x32xf32>
    tpu.vector_store %arg24[%c0_44, %c0_45], %84 {strides = array<i32>} : memref<8x32xf32, #tpu.memory_space<vmem>>, vector<8x32xf32>,
    %c0_46 = arith.constant 0 : index
    %c0_47 = arith.constant 0 : index
    %86 = vector.load %arg10[%c0_46, %c0_47] : memref<32x16xbf16, #tpu.memory_space<vmem>>, vector<32x16xbf16>
    %cst_48 = arith.constant dense<0.000000e+00> : vector<8x16xf32>
    %87 = tpu.matmul %67, %86, %cst_48 {dimension_numbers = #tpu.dot_dimension_numbers<[1], [0], [0], [1], [0, 0, 1, 1], [], []>} : vector<8x32xbf16>, vector<32x16xbf16>, vector<8x16xf32> -> vector<8x16xf32>
    %c0_49 = arith.constant 0 : index
    %c0_50 = arith.constant 0 : index
    %88 = vector.load %arg25[%c0_49, %c0_50] : memref<8x16xf32, #tpu.memory_space<vmem>>, vector<8x16xf32>
    tpu.vector_store %arg25[%c0_49, %c0_50], %87 {strides = array<i32>} : memref<8x16xf32, #tpu.memory_space<vmem>>, vector<8x16xf32>,
    %c0_51 = arith.constant 0 : index
    %c0_52 = arith.constant 0 : index
    %89 = vector.load %arg11[%c0_51, %c0_52] : memref<32x16xbf16, #tpu.memory_space<vmem>>, vector<32x16xbf16>
    %cst_53 = arith.constant dense<0.000000e+00> : vector<8x16xf32>
    %90 = tpu.matmul %67, %89, %cst_53 {dimension_numbers = #tpu.dot_dimension_numbers<[1], [0], [0], [1], [0, 0, 1, 1], [], []>} : vector<8x32xbf16>, vector<32x16xbf16>, vector<8x16xf32> -> vector<8x16xf32>
    %c0_54 = arith.constant 0 : index
    %c0_55 = arith.constant 0 : index
    %91 = vector.load %arg26[%c0_54, %c0_55] : memref<8x16xf32, #tpu.memory_space<vmem>>, vector<8x16xf32>
    tpu.vector_store %arg26[%c0_54, %c0_55], %90 {strides = array<i32>} : memref<8x16xf32, #tpu.memory_space<vmem>>, vector<8x16xf32>,
    %c0_56 = arith.constant 0 : index
    %c0_57 = arith.constant 0 : index
    %92 = vector.load %arg14[%c0_56, %c0_57] : memref<16x32xf32, #tpu.memory_space<vmem>>, vector<16x32xf32>
    %93 = tpu.iota {dimensions = array<i32: 0>} : vector<16x16xi32>
    %94 = tpu.iota {dimensions = array<i32: 1>} : vector<16x16xi32>
    %c0_i32_58 = arith.constant 0 : i32
    %95 = vector.broadcast %c0_i32_58 : i32 to vector<16x16xi32>
    %96 = arith.addi %93, %95 : vector<16x16xi32>
    %97 = arith.cmpi eq, %96, %94 : vector<16x16xi32>
    %98 = arith.extui %97 : vector<16x16xi1> to vector<16x16xi32>
    %99 = arith.sitofp %98 : vector<16x16xi32> to vector<16x16xf32>
    %c0_59 = arith.constant 0 : index
    %c0_60 = arith.constant 0 : index
    %100 = vector.load %arg21[%c0_59, %c0_60] : memref<16x32xf32, #tpu.memory_space<vmem>>, vector<16x32xf32>
    %c0_i32_61 = arith.constant 0 : i32
    %c8_i32 = arith.constant 8 : i32
    %101 = arith.addi %c0_i32_61, %c8_i32 : i32
    %c1_i32 = arith.constant 1 : i32
    %102 = scf.for %arg28 = %c0_i32_61 to %101 step %c1_i32 iter_args(%arg29 = %100) -> (vector<16x32xf32>)  : i32 {
      %152 = arith.index_cast %arg28 : i32 to index
      %c0_87 = arith.constant 0 : index
      %153 = vector.load %arg23[%152, %c0_87] : memref<8x32xf32, #tpu.memory_space<vmem>>, vector<1x32xf32>
      %154 = arith.index_cast %arg28 : i32 to index
      %c0_88 = arith.constant 0 : index
      %155 = vector.load %arg24[%154, %c0_88] : memref<8x32xf32, #tpu.memory_space<vmem>>, vector<1x32xf32>
      %156 = arith.index_cast %arg28 : i32 to index
      %c0_89 = arith.constant 0 : index
      %157 = vector.load %arg25[%156, %c0_89] : memref<8x16xf32, #tpu.memory_space<vmem>>, vector<1x16xf32>
      %158 = arith.index_cast %arg28 : i32 to index
      %c0_90 = arith.constant 0 : index
      %159 = vector.load %arg26[%158, %c0_90] : memref<8x16xf32, #tpu.memory_space<vmem>>, vector<1x16xf32>
      %160 = vector.broadcast %153 : vector<1x32xf32> to vector<16x32xf32>
      %161 = arith.mulf %160, %92 : vector<16x32xf32>
      %162 = math.exp %161 : vector<16x32xf32>
      %163 = vector.broadcast %157 : vector<1x16xf32> to vector<16x16xf32>
      %164 = arith.mulf %163, %99 : vector<16x16xf32>
      %165 = vector.shape_cast %155 : vector<1x32xf32> to vector<1x32xf32>
      %166 = vector.broadcast %165 : vector<1x32xf32> to vector<16x32xf32>
      %cst_91 = arith.constant dense<0.000000e+00> : vector<16x32xf32>
      %167 = tpu.matmul %164, %166, %cst_91 {dimension_numbers = #tpu.dot_dimension_numbers<[1], [0], [0], [1], [0, 0, 1, 1], [], []>} : vector<16x16xf32>, vector<16x32xf32>, vector<16x32xf32> -> vector<16x32xf32>
      %168 = arith.mulf %162, %arg29 : vector<16x32xf32>
      %169 = arith.addf %168, %167 : vector<16x32xf32>
      %cst_92 = arith.constant dense<0.000000e+00> : vector<1x32xf32>
      %170 = tpu.matmul %159, %169, %cst_92 {dimension_numbers = #tpu.dot_dimension_numbers<[1], [0], [0], [1], [0, 0, 1, 1], [], []>} : vector<1x16xf32>, vector<16x32xf32>, vector<1x32xf32> -> vector<1x32xf32>
      %171 = arith.index_cast %arg28 : i32 to index
      %c0_93 = arith.constant 0 : index
      %172 = vector.load %arg27[%171, %c0_93] : memref<8x32xf32, #tpu.memory_space<vmem>>, vector<1x32xf32>
      tpu.vector_store %arg27[%171, %c0_93], %170 {strides = array<i32>} : memref<8x32xf32, #tpu.memory_space<vmem>>, vector<1x32xf32>,
      scf.yield %169 : vector<16x32xf32>
    }
    %c8_i32_62 = arith.constant 8 : i32
    %c0_63 = arith.constant 0 : index
    %c0_64 = arith.constant 0 : index
    %103 = vector.load %arg21[%c0_63, %c0_64] : memref<16x32xf32, #tpu.memory_space<vmem>>, vector<16x32xf32>
    tpu.vector_store %arg21[%c0_63, %c0_64], %102 {strides = array<i32>} : memref<16x32xf32, #tpu.memory_space<vmem>>, vector<16x32xf32>,
    %c0_65 = arith.constant 0 : index
    %c0_66 = arith.constant 0 : index
    %104 = vector.load %arg27[%c0_65, %c0_66] : memref<8x32xf32, #tpu.memory_space<vmem>>, vector<8x32xf32>
    %c0_67 = arith.constant 0 : index
    %c0_68 = arith.constant 0 : index
    %105 = vector.load %arg15[%c0_67, %c0_68] : memref<1x32xf32, #tpu.memory_space<vmem>>, vector<1x32xf32>
    %106 = vector.broadcast %105 : vector<1x32xf32> to vector<8x32xf32>
    %107 = arith.mulf %66, %106 : vector<8x32xf32>
    %108 = arith.addf %104, %107 : vector<8x32xf32>
    %109 = arith.negf %28 : vector<8x32xf32>
    %110 = math.exp %109 : vector<8x32xf32>
    %cst_69 = arith.constant 1.000000e+00 : f32
    %111 = vector.broadcast %cst_69 : f32 to vector<8x32xf32>
    %112 = arith.addf %111, %110 : vector<8x32xf32>
    %113 = arith.divf %111, %112 : vector<8x32xf32>
    %114 = arith.mulf %28, %113 : vector<8x32xf32>
    %115 = arith.mulf %108, %114 : vector<8x32xf32>
    %116 = arith.truncf %115 : vector<8x32xf32> to vector<8x32xbf16>
    %c0_70 = arith.constant 0 : index
    %c0_71 = arith.constant 0 : index
    %117 = vector.load %arg16[%c0_70, %c0_71] : memref<32x16xbf16, #tpu.memory_space<vmem>>, vector<32x16xbf16>
    %cst_72 = arith.constant dense<0.000000e+00> : vector<8x16xf32>
    %118 = tpu.matmul %116, %117, %cst_72 {dimension_numbers = #tpu.dot_dimension_numbers<[1], [0], [0], [1], [0, 0, 1, 1], [], []>} : vector<8x32xbf16>, vector<32x16xbf16>, vector<8x16xf32> -> vector<8x16xf32>
    %c0_73 = arith.constant 0 : index
    %119 = memref.load %arg19[%c0_73] : memref<1xf32, #tpu.memory_space<smem>>
    %120 = vector.broadcast %119 : f32 to vector<8x16xf32>
    %121 = arith.mulf %120, %3 : vector<8x16xf32>
    %122 = arith.addf %118, %121 : vector<8x16xf32>
    %cst_74 = arith.constant dense<0.000000e+00> : vector<8xf32>
    %123 = vector.multi_reduction <add>, %122, %cst_74 [1] : vector<8x16xf32> to vector<8xf32>
    %124 = vector.shape_cast %123 : vector<8xf32> to vector<8x1xf32>
    %cst_75 = arith.constant 1.600000e+01 : f32
    %125 = vector.broadcast %cst_75 : f32 to vector<8x1xf32>
    %126 = arith.divf %124, %125 : vector<8x1xf32>
    %127 = vector.broadcast %126 : vector<8x1xf32> to vector<8x16xf32>
    %128 = arith.subf %122, %127 : vector<8x16xf32>
    %129 = arith.mulf %128, %128 : vector<8x16xf32>
    %cst_76 = arith.constant dense<0.000000e+00> : vector<8xf32>
    %130 = vector.multi_reduction <add>, %129, %cst_76 [1] : vector<8x16xf32> to vector<8xf32>
    %131 = vector.shape_cast %130 : vector<8xf32> to vector<8x1xf32>
    %cst_77 = arith.constant 1.600000e+01 : f32
    %132 = vector.broadcast %cst_77 : f32 to vector<8x1xf32>
    %133 = arith.divf %131, %132 : vector<8x1xf32>
    %cst_78 = arith.constant 9.99999974E-6 : f32
    %134 = vector.broadcast %cst_78 : f32 to vector<8x1xf32>
    %135 = arith.addf %133, %134 : vector<8x1xf32>
    %136 = math.rsqrt %135 : vector<8x1xf32>
    %137 = vector.broadcast %136 : vector<8x1xf32> to vector<8x16xf32>
    %138 = arith.mulf %128, %137 : vector<8x16xf32>
    %139 = vector.broadcast %0 : vector<1x16xf32> to vector<8x16xf32>
    %140 = arith.mulf %138, %139 : vector<8x16xf32>
    %141 = vector.broadcast %1 : vector<1x16xf32> to vector<8x16xf32>
    %142 = arith.addf %140, %141 : vector<8x16xf32>
    %143 = arith.truncf %142 : vector<8x16xf32> to vector<8x16xbf16>
    %c0_79 = arith.constant 0 : index
    %c0_80 = arith.constant 0 : index
    %144 = vector.load %arg17[%c0_79, %c0_80] : memref<16x128xbf16, #tpu.memory_space<vmem>>, vector<16x128xbf16>
    %cst_81 = arith.constant dense<0.000000e+00> : vector<8x128xf32>
    %145 = tpu.matmul %143, %144, %cst_81 {dimension_numbers = #tpu.dot_dimension_numbers<[1], [0], [0], [1], [0, 0, 1, 1], [], []>} : vector<8x16xbf16>, vector<16x128xbf16>, vector<8x128xf32> -> vector<8x128xf32>
    %c0_82 = arith.constant 0 : index
    %c0_83 = arith.constant 0 : index
    %146 = vector.load %arg18[%c0_82, %c0_83] : memref<1x128xf32, #tpu.memory_space<vmem>>, vector<1x128xf32>
    %147 = vector.broadcast %146 : vector<1x128xf32> to vector<8x128xf32>
    %148 = arith.addf %145, %147 : vector<8x128xf32>
    %c0_84 = arith.constant 0 : index
    %c0_85 = arith.constant 0 : index
    %c0_86 = arith.constant 0 : index
    %149 = vector.load %arg20[%c0_84, %c0_85, %c0_86] : memref<1x8x128xf32, #tpu.memory_space<vmem>>, vector<1x8x128xf32>
    %150 = vector.shape_cast %149 : vector<1x8x128xf32> to vector<8x128xf32>
    %151 = vector.shape_cast %148 : vector<8x128xf32> to vector<1x8x128xf32>
    tpu.vector_store %arg20[%c0_84, %c0_85, %c0_86], %151 {strides = array<i32>} : memref<1x8x128xf32, #tpu.memory_space<vmem>>, vector<1x8x128xf32>,
    return
  }
  func.func @transform_0(%arg0: i32, %arg1: i32) -> (i32, i32, i32) {
    %c0_i32 = arith.constant 0 : i32
    %c0_i32_0 = arith.constant 0 : i32
    return %arg0, %arg1, %c0_i32 : i32, i32, i32
  }
  func.func @transform_1(%arg0: i32, %arg1: i32) -> (i32, i32) {
    %c0_i32 = arith.constant 0 : i32
    %c0_i32_0 = arith.constant 0 : i32
    %c0_i32_1 = arith.constant 0 : i32
    return %c0_i32, %c0_i32_0 : i32, i32
  }
  func.func @transform_2(%arg0: i32, %arg1: i32) -> (i32, i32) {
    %c0_i32 = arith.constant 0 : i32
    %c0_i32_0 = arith.constant 0 : i32
    %c0_i32_1 = arith.constant 0 : i32
    return %c0_i32, %c0_i32_0 : i32, i32
  }
  func.func @transform_3(%arg0: i32, %arg1: i32) -> (i32, i32) {
    %c0_i32 = arith.constant 0 : i32
    %c0_i32_0 = arith.constant 0 : i32
    %c0_i32_1 = arith.constant 0 : i32
    return %c0_i32, %c0_i32_0 : i32, i32
  }
  func.func @transform_4(%arg0: i32, %arg1: i32) -> (i32, i32) {
    %c0_i32 = arith.constant 0 : i32
    %c0_i32_0 = arith.constant 0 : i32
    %c0_i32_1 = arith.constant 0 : i32
    return %c0_i32, %c0_i32_0 : i32, i32
  }
  func.func @transform_5(%arg0: i32, %arg1: i32) -> (i32, i32) {
    %c0_i32 = arith.constant 0 : i32
    %c0_i32_0 = arith.constant 0 : i32
    %c0_i32_1 = arith.constant 0 : i32
    return %c0_i32, %c0_i32_0 : i32, i32
  }
  func.func @transform_6(%arg0: i32, %arg1: i32) -> (i32, i32) {
    %c0_i32 = arith.constant 0 : i32
    %c0_i32_0 = arith.constant 0 : i32
    %c0_i32_1 = arith.constant 0 : i32
    return %c0_i32, %c0_i32_0 : i32, i32
  }
  func.func @transform_7(%arg0: i32, %arg1: i32) -> (i32, i32) {
    %c0_i32 = arith.constant 0 : i32
    %c0_i32_0 = arith.constant 0 : i32
    %c0_i32_1 = arith.constant 0 : i32
    return %c0_i32, %c0_i32_0 : i32, i32
  }
  func.func @transform_8(%arg0: i32, %arg1: i32) -> (i32, i32) {
    %c0_i32 = arith.constant 0 : i32
    %c0_i32_0 = arith.constant 0 : i32
    %c0_i32_1 = arith.constant 0 : i32
    return %c0_i32, %c0_i32_0 : i32, i32
  }
  func.func @transform_9(%arg0: i32, %arg1: i32) -> (i32, i32) {
    %c0_i32 = arith.constant 0 : i32
    %c0_i32_0 = arith.constant 0 : i32
    %c0_i32_1 = arith.constant 0 : i32
    return %c0_i32, %c0_i32_0 : i32, i32
  }
  func.func @transform_10(%arg0: i32, %arg1: i32) -> (i32, i32) {
    %c0_i32 = arith.constant 0 : i32
    %c0_i32_0 = arith.constant 0 : i32
    %c0_i32_1 = arith.constant 0 : i32
    return %c0_i32, %c0_i32_0 : i32, i32
  }
  func.func @transform_11(%arg0: i32, %arg1: i32) -> (i32, i32) {
    %c0_i32 = arith.constant 0 : i32
    %c0_i32_0 = arith.constant 0 : i32
    %c0_i32_1 = arith.constant 0 : i32
    return %c0_i32, %c0_i32_0 : i32, i32
  }
  func.func @transform_12(%arg0: i32, %arg1: i32) -> (i32, i32) {
    %c0_i32 = arith.constant 0 : i32
    %c0_i32_0 = arith.constant 0 : i32
    %c0_i32_1 = arith.constant 0 : i32
    return %c0_i32, %c0_i32_0 : i32, i32
  }
  func.func @transform_13(%arg0: i32, %arg1: i32) -> (i32, i32) {
    %c0_i32 = arith.constant 0 : i32
    %c0_i32_0 = arith.constant 0 : i32
    %c0_i32_1 = arith.constant 0 : i32
    return %c0_i32, %c0_i32_0 : i32, i32
  }
  func.func @transform_14(%arg0: i32, %arg1: i32) -> (i32, i32) {
    %c0_i32 = arith.constant 0 : i32
    %c0_i32_0 = arith.constant 0 : i32
    %c0_i32_1 = arith.constant 0 : i32
    return %c0_i32, %c0_i32_0 : i32, i32
  }
  func.func @transform_15(%arg0: i32, %arg1: i32) -> (i32, i32) {
    %c0_i32 = arith.constant 0 : i32
    %c0_i32_0 = arith.constant 0 : i32
    %c0_i32_1 = arith.constant 0 : i32
    return %c0_i32, %c0_i32_0 : i32, i32
  }
  func.func @transform_16(%arg0: i32, %arg1: i32) -> (i32, i32) {
    %c0_i32 = arith.constant 0 : i32
    %c0_i32_0 = arith.constant 0 : i32
    %c0_i32_1 = arith.constant 0 : i32
    return %c0_i32, %c0_i32_0 : i32, i32
  }
  func.func @transform_17(%arg0: i32, %arg1: i32) -> i32 {
    %c0_i32 = arith.constant 0 : i32
    %c0_i32_0 = arith.constant 0 : i32
    return %c0_i32 : i32
  }
  func.func @transform_18(%arg0: i32, %arg1: i32) -> (i32, i32, i32) {
    %c0_i32 = arith.constant 0 : i32
    %c0_i32_0 = arith.constant 0 : i32
    return %arg0, %arg1, %c0_i32 : i32, i32, i32
  }
}

</mosaic_0001>

<bundles_post_ra>
// kernel: tpu_custom_call.1
= control target key start
LH: loop header
LB: loop body
LE: loop exit
PB: predicated region body
PF: predicated region fallthrough
CT: control target
= control target key end

     0   :  { %s2511_s0 = inlined_call_operand.vmem [shape: f32[2,16,16], index: 0, kind: input, shape index: {}]   ;;  %s2512_s1 = inlined_call_operand.hbm [shape: f32[1,16], index: 1, kind: input, shape index: {}]   ;;  %s2513_s2 = inlined_call_operand.hbm [shape: f32[1,16], index: 2, kind: input, shape index: {}]   ;;  %s2514_s3 = inlined_call_operand.vmem [shape: bf16[16,32], index: 3, kind: input, shape index: {}]   ;;  %s2515_s4 = inlined_call_operand.vmem [shape: bf16[16,32], index: 4, kind: input, shape index: {}]   ;;  %s2516_s5 = inlined_call_operand.vmem [shape: f32[4,32], index: 5, kind: input, shape index: {}]   ;;  %s2517_s6 = inlined_call_operand.vmem [shape: f32[1,32], index: 6, kind: input, shape index: {}]   ;;  %s2518_s7 = inlined_call_operand.vmem [shape: bf16[32,1], index: 7, kind: input, shape index: {}]   ;;  %s2519_s8 = inlined_call_operand.vmem [shape: bf16[32,16], index: 8, kind: input, shape index: {}]   ;;  %s2520_s9 = inlined_call_operand.vmem [shape: bf16[32,16], index: 9, kind: input, shape index: {}]   ;;  %s2521_s10 = inlined_call_operand.vmem [shape: bf16[1,32], index: 10, kind: input, shape index: {}]   ;;  %s2522_s11 = inlined_call_operand.vmem [shape: f32[1,32], index: 11, kind: input, shape index: {}]   ;;  %s2523_s12 = inlined_call_operand.vmem [shape: f32[16,32], index: 12, kind: input, shape index: {}]   ;;  %s2524_s13 = inlined_call_operand.vmem [shape: f32[1,32], index: 13, kind: input, shape index: {}]   ;;  %s2525_s14 = inlined_call_operand.vmem [shape: bf16[32,16], index: 14, kind: input, shape index: {}]   ;;  %s2526_s15 = inlined_call_operand.vmem [shape: bf16[16,128], index: 15, kind: input, shape index: {}]   ;;  %s2527_s16 = inlined_call_operand.vmem [shape: f32[1,128], index: 16, kind: input, shape index: {}]   ;;  %s2528_s17 = inlined_call_operand.<no memory space> [shape: f32[1], index: 17, kind: input, shape index: {}]   ;;  %s2529_s18 = inlined_call_operand.hbm [shape: f32[2,16,128], index: 18, kind: output, shape index: {}]  }
   0x1   :  { %2539 = sst [smem:[#allocation26_spill]] %s2511_s0 }
   0x2   :  { %2540 = sst [smem:[#allocation27_spill]] %s2512_s1 }
   0x3   :  { %2541 = sst [smem:[#allocation28_spill]] %s2513_s2 }
   0x4   :  { %2542 = sst [smem:[#allocation29_spill]] %s2514_s3 }
   0x5   :  { %2543 = sst [smem:[#allocation30_spill]] %s2515_s4 }
   0x6   :  { %2544 = sst [smem:[#allocation31_spill]] %s2527_s16 }
   0x7   :  { %2545 = sst [smem:[#allocation32_spill]] %s2529_s18 }
   0x8   :  { %23 = sst [smem:[#allocation9]] %s2528_s17 }
   0x9   :  { %24 = vsyncpa [#allocation11], 0 }
   0xa   :  { %25 = vsyncpa [#allocation14], 0 }
   0xb   :  { %26 = vsyncpa [#allocation12], 0 }
   0xc   :  { %28 = vsyncpa [#allocation12 + $0x1], 0  ;;  %s2162_s29 = smov 0   ;;  %s2164_s30 = smov 0  }
   0xd   :  { %s2166_s0 = smov 0   ;;  %s2168_s19 = smov 0  }
   0xe   :  { %s2170_s1 = smov 0   ;;  %s2172_s20 = smov 0  }
   0xf   :  { %s2174_s21 = smov 0   ;;  %s2176_s22 = smov 0  }
  0x10 LB: > { %2546 = sst [smem:[#allocation19_spill]] %s2013_s29  ;;  %s1573_s17 = sadd.s32 4294967295, %s2041_s22   ;;  %s2041_s22 = sphi %s2176_s22, %s34_s22   ;;  %s2037_s21 = sphi %s2174_s21, %s2575_s21   ;;  %s2033_s20 = sphi %s2172_s20, %s2574_s20   ;;  %s2029_s1 = sphi %s2170_s1, %s2573_s1   ;;  %s2025_s19 = sphi %s2168_s19, %s2572_s19   ;;  %s2021_s0 = sphi %s2166_s0, %s2578_s0   ;;  %s2017_s30 = sphi %s2164_s30, %s2577_s30   ;;  %s2013_s29 = sphi %s2162_s29, %s2576_s29  }
  0x11   : > { %2547 = sst [smem:[#allocation20_spill]] %s2033_s20  ;;  %s1574_s2 = sadd.s32 4294967294, %s2041_s22  }
  0x12   : > { %2548 = sst [smem:[#allocation21_spill]] %s2037_s21  ;;  %s43_s23 = sadd.s32 1, %s2033_s20 }
  0x13   : > { %s46_s24 = sadd.s32 1, %s2037_s21  ;;  %p44_p0 = scmp.ge.s32.totalorder %s43_s23, 2 }
  0x14   : > { %s440_s25 = sadd.s32 1, %s2021_s0  ;;  %p450_p1 = scmp.ne.s32.totalorder %s2021_s0, %s2017_s30 }
  0x15   : > { %p451_p2 = scmp.eq.s32.totalorder %s1573_s17, 3  ;;  %s2580_s23 = smov (%p44_p0, %s43_s23), 0 }
  0x16   : > { %2549 = sst [smem:[#allocation22_spill]] %s2580_s23  ;;  %s2582_s24 = smov (!%p44_p0, %s46_s24), %s2037_s21 }
  0x17   : > { %s436_s26 = ssub.s32 %s2033_s20, %s2580_s23  ;;  %p2214_p3 = por %p451_p2, %p450_p1 }
  0x18   : > { %p48_p4 = scmp.ge.s32.totalorder %s2582_s24, 2  ;;  %p456_p5 = scmp.ne.s32.totalorder %s2017_s30, %s2013_s29 }
  0x19   : > { %s2550_s27 = scalar_select %p2214_p3, 1, 0 }
  0x1a   : > { %p457_p6 = scmp.eq.s32.totalorder %s1574_s2, 3  ;;  %p1575_p7 = scmp.ge.s32.totalorder %s2041_s22, 1 }
  0x1b   : > { %s2584_s24 = smov (%p48_p4, %s2582_s24), 0  ;;  %p464_p9 = scmp.lt.s32.totalorder %s2041_s22, 5 }
  0x1c   : > { %2551 = sst [smem:[#allocation23_spill]] %s2584_s24  ;;  %p2223_p8 = por %p457_p6, %p456_p5 }
  0x1d   : > { %s435_s18 = ssub.s32 %s2037_s21, %s2584_s24  ;;  %p2230_p10 = pnand %p1575_p7, %p464_p9 }
  0x1e   : > { %s2552_s28 = scalar_select %p2223_p8, 1, 0 }
  0x1f   : > { %s437_s16 = sor.u32 %s436_s26, %s435_s18  ;;  %p2234_p12 = scmp.eq.s32.totalorder %s1573_s17, 0 }
  0x20   : > { %2553 = sst [smem:[#allocation24_spill]] %s2552_s28  ;;  %p438_p11 = scmp.eq.s32.totalorder %s437_s16, 0 }
  0x21   : > { %p1734_p13 = pneg %p2230_p10  ;;  %s2055_s29 = smov [#allocation10]  }
  0x22   : > { %s2241_s2 = scalar_select %p438_p11, %s2021_s0, %s440_s25  }
  0x23   : > { %s477_s28 = sshll.u32 %s2055_s29, 4  ;;  %p2245_p0 = pnand %p2234_p12, %p1734_p13  ;;  %s478_s28 = int_to_ptr.vmem [resolvable:$true] %s477_s28 }
  0x24   : > { %2556 = sst [smem:[#allocation25_spill]] %s2241_s2  ;;  %s2056_s16 = smov [#allocation13]  }
  0x25   : > { %s488_s17 = sshll.u32 %s2056_s16, 4  ;;  %p1879_p1 = pneg %p2245_p0  ;;  %s489_s17 = int_to_ptr.vmem [resolvable:$true] %s488_s17 }
  0x26   : > { %s1888_s26 = scalar_lea.vmem %s478_s28, 16  ;;  %s1895_s25 = scalar_lea.vmem %s478_s28, 32 }
  0x27   : > { %p1889_p2 = scmp.ne.s32.totalorder %s478_s28, %s1888_s26  ;;  %p1896_p6 = scmp.lt.s32.totalorder %s478_s28, %s478_s28 }
  0x28   : > { %p1897_p7 = scmp.lt.s32.totalorder %s1895_s25, %s1888_s26 }
  0x29   : > { %p1891_p4 = pnand %p1889_p2, %p1879_p1 }
  0x2a   : > { %p1898_p9 = por %p1897_p7, %p1896_p6 }
  0x2b   : > { %p1892_p5 = pneg %p1891_p4 }
  0x2d   : > { %p1899_p11 = pnand %p1898_p9, %p1892_p5 }
  0x2f   : > { %1902 = shalt.err (!%p1899_p11)
}
  0x30   : > { %s2558_s21 = sld [smem:[#allocation27_spill]]  ;;  %s1914_s16 = scalar_lea.vmem %s489_s17, 16 }
  0x31   : > { %p1915_p13 = scmp.ne.s32.totalorder %s489_s17, %s1914_s16  ;;  %s1921_s2 = scalar_lea.vmem %s489_s17, 32 }
  0x32   : > { %p1922_p8 = scmp.lt.s32.totalorder %s489_s17, %s489_s17  ;;  %p1923_p3 = scmp.lt.s32.totalorder %s1921_s2, %s1914_s16 }
  0x33   : > { %p1917_p2 = pnand %p1915_p13, %p1879_p1 }
  0x34   : > { %p1924_p6 = por %p1923_p3, %p1922_p8 }
  0x35   : > { %p1918_p4 = pneg %p1917_p2 }
  0x36   : > { %1737 = dma.hbm_to_vmem [thread:$0]  (!%p2245_p0), %s2558_s21, 16, %s478_s28, [#allocation11]  }
  0x37   : > { %p1925_p5 = pnand %p1924_p6, %p1918_p4 }
  0x39   : > { %1928 = shalt.err (!%p1925_p5)
}
  0x3a   : > { %s2559_s24 = sld [smem:[#allocation28_spill]] }
  0x3c   : > { %557 = sbr.rel (%p2230_p10) target bundleno = 2215 (0x8a7), region = 92 }
  0x40   : > { %1740 = dma.hbm_to_vmem [thread:$0]  (!%p2245_p0), %s2559_s24, 16, %s489_s17, [#allocation14]  }
  0x41   : > { %2000 = dma.done.wait (%p2234_p12), [#allocation11], 16  }
  0x42   : > { %2002 = vsyncadd (%p2234_p12), [#allocation11], 4294967280 }
  0x43   : > { %2004 = dma.done.wait (%p2234_p12), [#allocation14], 16  }
  0x44   : > { %2006 = vsyncadd (%p2234_p12), [#allocation14], 4294967280  ;;  %p618_p3 = scmp.lt.s32.totalorder %s2029_s1, 1  ;;  %p620_p8 = scmp.lt.s32.totalorder %s2025_s19, 1  ;;  %vm630_vm0 = vcmask 130048   ;;  %v2057_v9 = vmov 0.0  }
  0x45   : > { %s2560_s16 = sld [smem:[#allocation26_spill]]  ;;  %s2538_s20 = sand.u32 1, %s2017_s30   ;;  %1654 = vmatprep.subr.bf16.mxu0 %v2057_v9  ;;  %1660 = vmatprep.subr.bf16.mxu1 %v2057_v9  ;;  %vm2058_vm1 = vmmov 0   ;;  %v2307_v14 = vld [vmem:[#allocation10] ss:$0 sm:$0xff] }
  0x46   : > { %s619_s21 = scalar_select %p618_p3, %s2029_s1, 1  ;;  %1656 = vmatprep.mubr.msk.bf16.mxu0 %vm2058_vm1, %v2057_v9  ;;  %1662 = vmatprep.mubr.msk.bf16.mxu1 %vm2058_vm1, %v2057_v9  ;;  %v2309_v16 = vld [vmem:[#allocation13] ss:$0 sm:$0xff] }
  0x47   : > { %s621_s23 = scalar_select %p620_p8, %s2025_s19, 1 }
  0x48   : > { %s1583_s28 = sshll.u32 %s619_s21, 1  ;;  %s2561_s3 = sld [smem:[#allocation29_spill]] }
  0x49   : > { %s623_s2 = sadd.s32 %s1583_s28, %s621_s23  ;;  %s2562_s4 = sld [smem:[#allocation30_spill]] }
  0x4a   : > { %s1584_s18 = sshll.u32 %s623_s2, 3  ;;  %s2299_s28 = sshll.u32 %s2538_s20, 3 }
  0x4b   : > { %s625_s26 = scalar_lea.vmem %s2560_s16, %s1584_s18  ;;  %s617_s2 = scalar_lea.vmem [#allocation15], %s2299_s28 }
  0x4c   : > { %v2284_v0 = vld [vmem:[%s625_s26] sm:$0xff]  ;;  %p1591_p10 = scmp.ne.s32.totalorder %s2025_s19, 0 }
  0x4d   : > { %v631_v1 = vsel %vm630_vm0, %v2284_v0, 0.0 }
  0x4e   : > { %632 = vadd.xlane.f32.xlu0 %v631_v1  ;;  %v1846_v7 = vld [vmem:[%s2561_s3] sm:$0xff]  }
  0x4f   : > { %v1847_v8 = vld [vmem:[%s2562_s4] sm:$0xff]   ;;  %1655 = vmatpush3.bf16.msra.mxu0 %v1846_v7 }
  0x50   : > { %1661 = vmatpush3.bf16.msra.mxu1 %v1847_v8 }
  0xd7   : > { %v633_v2 = vpop.xlane.xlu0 %632 }
  0xd8   : > { %v635_v3 = vmul.f32 0.0625, %v633_v2 }
  0xda   : > { %v636_v4 = vsub.f32 %v2284_v0, %v635_v3 }
  0xdc   : > { %v637_v5 = vmul.f32 %v636_v4, %v636_v4 }
  0xde   : > { %v638_v6 = vsel %vm630_vm0, %v637_v5, 0.0 }
  0xdf   : > { %639 = vadd.xlane.f32.xlu0 %v638_v6 }
 0x168   : > { %v640_v10 = vpop.xlane.xlu0 %639 }
 0x169   : > { %v641_v11 = vmul.f32 0.0625, %v640_v10 }
 0x16b   : > { %v642_v12 = vadd.f32 1e-05, %v641_v11 }
 0x16d   : > { %1848 = vrsqrt.f32 %v642_v12 }
 0x17a   : > { %v1849_v13 = vpop.eup %1848 }
 0x17b   : > { %v644_v15 = vmul.f32 %v1849_v13, %v636_v4 }
 0x17d   : > { %v651_v17 = vmul.f32 %v2307_v14, %v644_v15 }
 0x17f   : > { %v658_v18 = vadd.f32 %v2309_v16, %v651_v17 }
 0x181   : > { %v659_v19 = vpack.c.bf16 %v658_v18, %v658_v18 }
 0x183   : > { %1657 = vmatmul.mubr.msk.bf16.vlgmr.msra.gmra.mxu0 %vm630_vm0, %v659_v19  ;;  %1663 = vmatmul.mubr.msk.bf16.vlgmr.msra.gmra.mxu1 %vm630_vm0, %v659_v19 }
 0x243   : > { %v705_v20 = vpop.f32.mrf.mxu0  ;;  %v2315_v21 = vpop.f32.mrf.mxu1 }
 0x245   : > { %v1658_v22 = vpop.f32.mrf.mxu0  ;;  %v1664_v23 = vpop.f32.mrf.mxu1  ;;  %762 = sbr.rel (%p1591_p10) target bundleno = 589 (0x24d), region = 104 }
 0x247   : > { %v708_v24 = vpop.f32.mrf.mxu0  ;;  %v756_v25 = vpop.f32.mrf.mxu1 }
 0x249   : > { %v1659_v26 = vpop.f32.mrf.mxu0  ;;  %v1665_v27 = vpop.f32.mrf.mxu1 }
 0x24a   : > { %vm763_vm2 = vcmask 256000   ;;  %vm765_vm3 = vcmask 261120   ;;  %v2059_v28 = vmov 0.0  }
 0x24b   : > { %764 = vst.msk [vmem:[#allocation3] sm:$0x7] %vm763_vm2, %v2059_v28 }
 0x24c   : > { %766 = vst.msk [vmem:[#allocation2] sm:$0xff] %vm765_vm3, %v2059_v28  ;;  %767 = vst.msk [vmem:[#allocation2 + $0x8] sm:$0xff] %vm765_vm3, %v2059_v28 }
 0x24d PF: > { %p1592_p12 = scmp.le.s32.totalorder %s2025_s19, 0 }
 0x24f   : > { %771 = sbr.rel (%p1592_p12) target bundleno = 598 (0x256), region = 108 }
 0x254   : > { %v772_v29 = vld [vmem:[#allocation3 + $0x8] sm:$0x7]  ;;  %vm773_vm4 = vcmask 256000  }
 0x255   : > { %774 = vst.msk [vmem:[#allocation3] sm:$0x7] %vm773_vm4, %v772_v29 }
 0x256 PF: > { %1666 = vmatprep.subr.bf16.mxu0 %v2057_v9  ;;  %v1850_v30 = vld [vmem:[%s2518_s7 + $0x8] sm:$0xff]   ;;  %1670 = vmatprep.mubr.msk.bf16.mxu0 %vm2058_vm1, %v2057_v9  ;;  %vm775_vm5 = vcmask 261120   ;;  %v779_v31 = vlaneseq  ;;  %v1851_v32 = vld [vmem:[%s2518_s7] sm:$0xff]   ;;  %vm894_vm8 = vcmask 1040384   ;;  %v2060_v4 = vmov 0   ;;  %s2394_s24 = smov 0  }
 0x257   : > { %776 = vst.msk [vmem:[#allocation3 + $0x3] sm:$0xff] %vm775_vm5, %v705_v20  ;;  %1674 = vmatprep.subr.bf16.mxu1 %v2057_v9  ;;  %1676 = vmatprep.mubr.msk.bf16.mxu1 %vm2058_vm1, %v2057_v9  ;;  %v777_v33 = vld [vmem:[%s2516_s5] sm:$0xf]  ;;  %v896_v5 = vsel %vm894_vm8, 65535, %v2060_v4  ;;  %v1852_v7 = vld [vmem:[%s2519_s8 + $0x8] sm:$0xff]   ;;  %vm890_vm9 = vcmask 7168  }
 0x258   : > { %1667 = vmatpush3.bf16.msra.mxu0 %v1850_v30  ;;  %v780_v34 = vshrl.u32 %v779_v31, 7  ;;  %v1077_v35 = vand.u32 127, %v779_v31  ;;  %v1593_v57 = vld [vmem:[%s2517_s6] ss:$0 sm:$0xff]  ;;  %v1853_v11 = vld [vmem:[%s2520_s9 + $0x8] sm:$0xff]  }
 0x259   : > { %1668 = vmatprep.subr.bf16.mxu0 %v2057_v9  ;;  %v882_v3 = vld [vmem:[%s2521_s10] sm:$0x1]  ;;  %v2385_v25 = vld [vmem:[%s2523_s12 + $0x8] sm:$0xff] }
 0x25a   : > { %v781_v36 = vsub.s32 0, %v780_v34  ;;  %v788_v37 = vsub.s32 1, %v780_v34  ;;  %v795_v38 = vsub.s32 2, %v780_v34  ;;  %v802_v39 = vsub.s32 3, %v780_v34  ;;  %v1854_v8 = vld [vmem:[%s2519_s8] sm:$0xff]   ;;  %v1085_v27 = vld [vmem:[#allocation2 + $0x8] sm:$0xff]  }
 0x25b   : > { %v1075_v40 = vadd.s32 8, %v780_v34  ;;  %vm1078_vm6 = vcmp.eq.s32.totalorder %v780_v34, %v1077_v35  ;;  %v898_v6 = vand.u32 %v896_v5, %v882_v3  ;;  %v1855_v17 = vld [vmem:[%s2520_s9] sm:$0xff]  }
 0x25c   : > { %1669 = vmatpush3.bf16.msra.mxu0 %v1851_v32  ;;  %v782_v41 = vrot.slane %v777_v33, %v781_v36  ;;  %v789_v42 = vrot.slane %v777_v33, %v788_v37  ;;  %v796_v43 = vrot.slane %v777_v33, %v795_v38  ;;  %v803_v44 = vrot.slane %v777_v33, %v802_v39  ;;  %v2380_v24 = vld [vmem:[%s2523_s12] sm:$0xff] }
 0x25d   : > { %vm1079_vm7 = vcmp.eq.s32.totalorder %v1075_v40, %v1077_v35  ;;  %v2338_v45 = vsel %vm1078_vm6, 1.0, %v2057_v9  ;;  %1680 = vmatprep.subr.bf16.mxu0 %v2057_v9  ;;  %1675 = vmatpush3.bf16.msra.mxu1 %v898_v6  ;;  %v1084_v26 = vld [vmem:[#allocation2] sm:$0xff]  }
 0x25e   : > { %v778_v46 = vld [vmem:[#allocation3] sm:$0xff]  ;;  %v2342_v49 = vsel %vm1079_vm7, 1.0, %v2057_v9  ;;  %1688 = vmatprep.subr.bf16.mxu1 %v2057_v9  ;;  %v1598_v28 = vld [vmem:[%s2522_s11] ss:$0 sm:$0xff] }
 0x25f   : > { %v785_v47 = vld [vmem:[#allocation3 + $0x1] sm:$0xff]  ;;  %v783_v50 = vmul.f32 %v782_v41, %v778_v46 }
 0x260   : > { %v792_v48 = vld [vmem:[#allocation3 + $0x2] sm:$0xff]  ;;  %v790_v51 = vmul.f32 %v789_v42, %v785_v47 }
 0x261   : > { %v797_v52 = vmul.f32 %v796_v43, %v792_v48  ;;  %v799_v53 = vld [vmem:[#allocation3 + $0x3] sm:$0xff] }
 0x262   : > { %v791_v54 = vadd.f32 %v790_v51, %v783_v50  ;;  %v804_v55 = vmul.f32 %v803_v44, %v799_v53  ;;  %v2043_v53 = vmov %v1085_v27  }
 0x264   : > { %v798_v56 = vadd.f32 %v797_v52, %v791_v54  ;;  %v2047_v54 = vmov %v1084_v26  }
 0x266   : > { %v805_v58 = vadd.f32 %v804_v55, %v798_v56 }
 0x268   : > { %v813_v59 = vadd.f32 %v1593_v57, %v805_v58 }
 0x26a   : > { %v1594_v60 = vmul.f32 -1.442695, %v813_v59 }
 0x26c   : > { %1856 = vpow2.f32 %v1594_v60 }
 0x279   : > { %v1857_v61 = vpop.eup %1856 }
 0x27a   : > { %v817_v62 = vadd.f32 1.0, %v1857_v61 }
 0x27c   : > { %1858 = vrcp.f32 %v817_v62 }
 0x289   : > { %v1859_v63 = vpop.eup %1858 }
 0x28a   : > { %v2347_v1 = vmul.f32 %v1859_v63, %v813_v59 }
 0x28c   : > { %v821_v2 = vpack.c.bf16 %v2347_v1, %v2347_v1 }
 0x28e   : > { %1671 = vmatmul.mubr.msk.bf16.vlgmr.msra.gmra.mxu0 %vm775_vm5, %v821_v2 }
 0x28f   : > { %1684 = vmatprep.mubr.msk.bf16.mxu0 %vm2058_vm1, %v2057_v9  ;;  %1681 = vmatpush3.bf16.msra.mxu0 %v1852_v7 }
 0x290   : > { %1682 = vmatprep.subr.bf16.mxu0 %v2057_v9 }
 0x293   : > { %1683 = vmatpush3.bf16.msra.mxu0 %v1854_v8 }
 0x296   : > { %1685 = vmatmul.mubr.msk.bf16.vlgmr.msra.gmra.mxu0 %vm775_vm5, %v821_v2 }
 0x34e   : > { %v875_v10 = vpop.f32.mrf.mxu0 }
 0x34f   : > { %v881_v12 = vpack.c.bf16 %v875_v10, %v875_v10 }
 0x350   : > { %v1672_v13 = vpop.f32.mrf.mxu0 }
 0x351   : > { %1677 = vmatmul.mubr.msk.bf16.vlgmr.msra.gmra.mxu1 %vm890_vm9, %v881_v12 }
 0x352   : > { %v878_v15 = vpop.f32.mrf.mxu0  ;;  %1689 = vmatpush3.bf16.msra.mxu1 %v1853_v11  ;;  %1692 = vmatprep.mubr.msk.bf16.mxu1 %vm2058_vm1, %v2057_v9 }
 0x353   : > { %1690 = vmatprep.subr.bf16.mxu1 %v2057_v9 }
 0x354   : > { %v1673_v18 = vpop.f32.mrf.mxu0 }
 0x356   : > { %1691 = vmatpush3.bf16.msra.mxu1 %v1855_v17  ;;  %v1007_v19 = vpop.f32.mrf.mxu0 }
 0x357   : > { %1013 = vst.msk [vmem:[#allocation6] sm:$0xff] %vm630_vm0, %v1007_v19 }
 0x358   : > { %v1686_v20 = vpop.f32.mrf.mxu0 }
 0x359   : > { %1693 = vmatmul.mubr.msk.bf16.vlgmr.msra.gmra.mxu1 %vm775_vm5, %v821_v2 }
 0x35a   : > { %v1010_v22 = vpop.f32.mrf.mxu0 }
 0x35c   : > { %v1687_v23 = vpop.f32.mrf.mxu0 }
 0x411   : > { %v934_v29 = vpop.f32.mrf.mxu1 }
 0x412   : > { %v935_v30 = vadd.f32 %v1598_v28, %v934_v29 }
 0x413   : > { %v1678_v31 = vpop.f32.mrf.mxu1 }
 0x414   : > { %v941_v32 = vmin.f32 %v935_v30, 20.0  ;;  %vm940_vm11 = vcmp.gt.f32.partialorder %v935_v30, 20.0 }
 0x415   : > { %v937_v33 = vpop.f32.mrf.mxu1 }
 0x416   : > { %v942_v34 = vmul.f32 1.442695, %v941_v32 }
 0x417   : > { %v1679_v35 = vpop.f32.mrf.mxu1 }
 0x418   : > { %1860 = vpow2.f32 %v942_v34 }
 0x419   : > { %v1064_v36 = vpop.f32.mrf.mxu1 }
 0x41a   : > { %1070 = vst.msk [vmem:[#allocation7] sm:$0xff] %vm630_vm0, %v1064_v36 }
 0x41b   : > { %v1694_v37 = vpop.f32.mrf.mxu1 }
 0x41d   : > { %v1067_v38 = vpop.f32.mrf.mxu1 }
 0x41f   : > { %v1695_v39 = vpop.f32.mrf.mxu1 }
 0x425   : > { %v1861_v40 = vpop.eup %1860 }
 0x426   : > { %v944_v41 = vadd.f32 1.0, %v1861_v40  ;;  %v947_v42 = vmul.f32 -0.5, %v1861_v40  ;;  %v950_v44 = vand.u32 2147483647, %v1861_v40 }
 0x428   : > { %1862 = vlog2.f32 %v944_v41  ;;  %v948_v43 = vadd.f32 1.0, %v947_v42  ;;  %vm951_vm10 = vcmp.lt.f32.partialorder %v950_v44, 0.0004427343 }
 0x42a   : > { %v949_v48 = vmul.f32 %v1861_v40, %v948_v43 }
 0x435   : > { %v1863_v46 = vpop.eup %1862 }
 0x436   : > { %v946_v47 = vmul.f32 0.6931472, %v1863_v46 }
 0x438   : > { %v952_v50 = vsel %vm951_vm10, %v949_v48, %v946_v47 }
 0x439   : > { %v953_v51 = vsel %vm940_vm11, %v935_v30, %v952_v50 }
 0x43a   : > { %954 = vst.msk [vmem:[#allocation4] sm:$0xff] %vm775_vm5, %v953_v51  ;;  %v955_v52 = vmul.f32 %v953_v51, %v2347_v1 }
 0x43c   : > { %956 = vst.msk [vmem:[#allocation5] sm:$0xff] %vm775_vm5, %v955_v52 }
 0x43d LB: >> { %s1096_s21 = scalar_lea.vmem [#allocation5], %s2053_s24  ;;  %s1098_s23 = scalar_lea.vmem [#allocation6], %s2053_s24  ;;  %v2061_v59 = vmov 0.0   ;;  %vm2062_vm12 = vmmov 0   ;;  %vm1281_vm13 = vcmask 253952   ;;  %s2053_s24 = sphi %s2394_s24, %s1091_s24   ;;  %v2049_v54 = vphi %v2047_v54, %v2048_v54   ;;  %v2045_v53 = vphi %v2043_v53, %v2044_v53  }
 0x43e   : >> { %v1609_v56 = vld [vmem:[%s1098_s23] ss:$0 sm:$0xff]  ;;  %1703 = vmatprep.subr.mxu1 %v2061_v59  ;;  %1707 = vmatprep.mubr.msk.f32.mxu1 %vm2062_vm12, %v2061_v59  ;;  %s1094_s18 = scalar_lea.vmem [#allocation4], %s2053_s24  ;;  %s1100_s17 = scalar_lea.vmem [#allocation7], %s2053_s24 }
 0x43f   : >> { %v1116_v57 = vmul.f32 %v1609_v56, %v2338_v45  ;;  %v1117_v58 = vmul.f32 %v1609_v56, %v2342_v49  ;;  %v1101_v12 = vld [vmem:[%s1100_s17] sm:$0x1]  ;;  %s1280_s29 = scalar_lea.vmem [#allocation8], %s2053_s24  ;;  %s1091_s24 = sadd.s32 1, %s2053_s24  }
 0x440   : >> { %p1088_p0 = scmp.ge.s32.totalorder %s1091_s24, 8  }
 0x441   : >> { %1700 = vmatprep.mubr.msk.f32.mxu0 %vm630_vm0, %v1116_v57  ;;  %v1608_v60 = vld [vmem:[%s1094_s18] ss:$0 sm:$0xff]  ;;  %v1868_v17 = vld [vmem:[%s2525_s14 + $0x8] sm:$0xff] (%p1088_p0)   ;;  %v1615_v49 = vmul.f32 (%p1088_p0), -1.442695, %v2315_v21  ;;  %s1308_s18 = sld [smem:[#allocation9]] (%p1088_p0) }
 0x442   : >> { %v1107_v61 = vmul.f32 %v1608_v60, %v2385_v25  ;;  %v1106_v62 = vmul.f32 %v1608_v60, %v2380_v24  ;;  %v1869_v45 = vld [vmem:[%s2525_s14] sm:$0xff] (%p1088_p0)   ;;  %s1623_s16 = sshll.u32 (%p1088_p0), %s2029_s1, 1  ;;  %s2564_s20 = sld [smem:[#allocation32_spill]] (%p1088_p0) }
 0x443   : >> { %v1610_v55 = vld [vmem:[%s1096_s21] ss:$0 sm:$0xff]  ;;  %s1453_s26 = sadd.s32 (%p1088_p0), %s2025_s19, %s1623_s16  ;;  %s2563_s21 = sld [smem:[#allocation31_spill]] (%p1088_p0) }
 0x444   : >> { %1696 = vmatprep.subr.mxu0 %v1610_v55  ;;  %v1110_v63 = vmul.f32 1.442695, %v1107_v61  ;;  %v1108_v2 = vmul.f32 1.442695, %v1106_v62  ;;  %v1614_v20 = vld [vmem:[%s2524_s13] ss:$0 sm:$0xff] (%p1088_p0) }
 0x445   : >> { %1697 = vmatpush3.msra.mxu0 %v1610_v55  ;;  %v1293_v22 = vmul.f32 (%p1088_p0), %v1614_v20, %v2347_v1  ;;  %s1624_s23 = sshll.u32 (%p1088_p0), %s1453_s26, 7  ;;  %s2566_s19 = sand.u32 (%p1088_p0), 1, %s2017_s30  }
 0x446   : >> { %1698 = vmatprep.subr.mxu0 %v1610_v55  ;;  %1864 = vpow2.f32 %v1110_v63  ;;  %s1442_s1 = scalar_lea.sflag (%p1088_p0), [#allocation12], %s2566_s19  ;;  %p2567_p7 = scmp.ne.s32.totalorder (%p1088_p0), %s2550_s27, 0 }
 0x447   : >> { %1699 = vmatpush3.msra.mxu0 %v1610_v55  ;;  %1866 = vpow2.f32 %v1108_v2  ;;  %s2063_s26 = smov (%p1088_p0), [#allocation15]  }
 0x448   : >> { %1701 = vmatmul.mubr.msk.f32.vlgmr.msra.gmra.mxu0 %vm630_vm0, %v1117_v58  ;;  %1710 = vmatprep.subr.bf16.mxu0 (%p1088_p0), %v2057_v9  ;;  %1871 = vpow2.f32 (%p1088_p0), %v1615_v49  ;;  %s2565_s3 = smov (%p1088_p0), %s2564_s20  ;;  %s2455_s4 = scalar_lea.hbm (%p1088_p0), %s2564_s20, %s1624_s23 }
 0x449   : > { %1714 = vmatprep.mubr.msk.bf16.mxu0 (%p1088_p0), %vm2058_vm1, %v2057_v9  ;;  %1711 = vmatpush3.bf16.msra.mxu0 (%p1088_p0), %v1868_v17  ;;  %v1619_v48 = vld [vmem:[%s2563_s21] ss:$0 sm:$0xff] (%p1088_p0)  ;;  %s1933_s25 = sshll.u32 (%p1088_p0), %s2063_s26, 4  ;;  %s1934_s25 = int_to_ptr.vmem [resolvable:$false] %s1933_s25 }
 0x44a   : > { %1712 = vmatprep.subr.bf16.mxu0 (%p1088_p0), %v2057_v9  ;;  %s1935_s20 = scalar_lea.vmem (%p1088_p0), %s1934_s25, 256 }
 0x44d   : > { %1713 = vmatpush3.bf16.msra.mxu0 (%p1088_p0), %v1869_v45 }
 0x453   : >> { %v1865_v3 = vpop.eup %1864 }
 0x454   : >> { %v1867_v4 = vpop.eup %1866  ;;  %v1204_v5 = vmul.f32 %v2045_v53, %v1865_v3 }
 0x455   : >> { %v1203_v6 = vmul.f32 %v2049_v54, %v1867_v4  ;;  %v1872_v18 = vpop.eup (%p1088_p0), %1871 }
 0x456   : > { %v1298_v19 = vadd.f32 (%p1088_p0), 1.0, %v1872_v18 }
 0x458   : > { %1873 = vrcp.f32 (%p1088_p0), %v1298_v19 }
 0x465   : > { %v1874_v25 = vpop.eup (%p1088_p0), %1873 }
 0x466   : > { %v1301_v26 = vmul.f32 (%p1088_p0), %v1874_v25, %v2315_v21 }
 0x508   : >> { %v1702_v7 = vpop.f32.mrf.mxu0 }
 0x509   : >> { %v1206_v8 = vadd.f32 %v1702_v7, %v1204_v5  }
 0x50a   : >> { %v1194_v10 = vpop.f32.mrf.mxu0 }
 0x50b   : >> { %v1205_v11 = vadd.f32 %v1203_v6, %v1194_v10   ;;  %1704 = vmatpush3.msra.mxu1 %v1206_v8  ;;  %v2044_v53 = vmov %v1206_v8   ;;  %1284 = vst.msk [vmem:[#allocation2 + $0x8] sm:$0xff] (%p1088_p0), %vm775_vm5, %v1206_v8 }
 0x50c   : >> { %1705 = vmatprep.subr.mxu1 %v2061_v59 }
 0x50d   : >> { %1706 = vmatpush3.msra.mxu1 %v1205_v11  ;;  %v2048_v54 = vmov %v1205_v11   ;;  %1283 = vst.msk [vmem:[#allocation2] sm:$0xff] (%p1088_p0), %vm775_vm5, %v1205_v11 }
 0x50e   : >> { %1708 = vmatmul.mubr.msk.f32.vlgmr.msra.gmra.mxu1 %vm630_vm0, %v1101_v12  ;;  %1718 = vmatprep.subr.bf16.mxu1 (%p1088_p0), %v2057_v9 }
 0x50f   : > { %1720 = vmatprep.mubr.msk.bf16.mxu1 (%p1088_p0), %vm2058_vm1, %v2057_v9  ;;  %v1309_v9 = vstv (%p1088_p0), %s1308_s18  ;;  %s1457_s18 = sshll.u32 (%p1088_p0), %s617_s2, 4  ;;  %s2457_s18 = int_to_ptr.vmem [resolvable:$true] %s1457_s18 }
 0x510   : > { %v1310_v29 = vmul.f32 (%p1088_p0), %v1309_v9, %v2284_v0  ;;  %v1870_v0 = vld [vmem:[%s2526_s15] sm:$0xff] (%p1088_p0)   ;;  %s1929_s16 = scalar_lea.vmem (%p1088_p0), %s2457_s18, 128  ;;  %p1936_p13 = scmp.lt.s32.totalorder (%p1088_p0), %s2457_s18, %s1934_s25 }
 0x511   : > { %1719 = vmatpush3.bf16.msra.mxu1 (%p1088_p0), %v1870_v0  ;;  %p1930_p1 = scmp.ne.s32.totalorder (%p1088_p0), %s2457_s18, %s1929_s16  ;;  %p1937_p2 = scmp.lt.s32.totalorder (%p1088_p0), %s1935_s20, %s1929_s16 }
 0x513   : > { %p1931_p9 = pnand (%p1088_p0), %p1930_p1, %p2567_p7  ;;  %p1938_p4 = por (%p1088_p0), %p1937_p2, %p1936_p13 }
 0x515   : > { %p1932_p11 = pneg (%p1088_p0), %p1931_p9 }
 0x517   : > { %p1939_p6 = pnand (%p1088_p0), %p1938_p4, %p1932_p11 }
 0x5cc   : > { %1090 = sbr.rel (!%p1088_p0) target bundleno = 1085 (0x43d), region = 156 }
 0x5ce   : >> { %v1276_v13 = vpop.f32.mrf.mxu1 }
 0x5cf   : >> { %1282 = vst.msk [vmem:[%s1280_s29] sm:$0x1] %vm1281_vm13, %v1276_v13 }
 0x5d0   : >> { %v1709_v15 = vpop.f32.mrf.mxu1 }
 0x5d6   : > { %v1285_v23 = vld [vmem:[#allocation8] sm:$0xff] }
 0x5d7   : > { %v1294_v24 = vadd.f32 %v1293_v22, %v1285_v23 }
 0x5d9   : > { %v1302_v27 = vmul.f32 %v1301_v26, %v1294_v24 }
 0x5db   : > { %v1303_v28 = vpack.c.bf16 %v1302_v27, %v1302_v27 }
 0x5dd   : > { %1715 = vmatmul.mubr.msk.bf16.vlgmr.msra.gmra.mxu0 %vm775_vm5, %v1303_v28 }
 0x69d   : > { %v1360_v30 = vpop.f32.mrf.mxu0 }
 0x69e   : > { %v1361_v31 = vadd.f32 %v1360_v30, %v1310_v29 }
 0x69f   : > { %v1716_v32 = vpop.f32.mrf.mxu0 }
 0x6a0   : > { %v1366_v33 = vsel %vm630_vm0, %v1361_v31, 0.0 }
 0x6a1   : > { %1367 = vadd.xlane.f32.xlu0 %v1366_v33  ;;  %v1363_v1 = vpop.f32.mrf.mxu0 }
 0x6a3   : > { %v1717_v34 = vpop.f32.mrf.mxu0 }
 0x72a   : > { %v1368_v35 = vpop.xlane.xlu0 %1367 }
 0x72b   : > { %v1369_v36 = vmul.f32 0.0625, %v1368_v35 }
 0x72d   : > { %v1370_v37 = vsub.f32 %v1361_v31, %v1369_v36 }
 0x72f   : > { %v1371_v21 = vmul.f32 %v1370_v37, %v1370_v37 }
 0x731   : > { %v1372_v38 = vsel %vm630_vm0, %v1371_v21, 0.0 }
 0x732   : > { %1373 = vadd.xlane.f32.xlu0 %v1372_v38 }
 0x7bb   : > { %v1374_v39 = vpop.xlane.xlu0 %1373 }
 0x7bc   : > { %v1375_v40 = vmul.f32 0.0625, %v1374_v39 }
 0x7be   : > { %v1376_v41 = vadd.f32 1e-05, %v1375_v40 }
 0x7c0   : > { %1875 = vrsqrt.f32 %v1376_v41 }
 0x7cd   : > { %v1876_v42 = vpop.eup %1875 }
 0x7ce   : > { %v1378_v43 = vmul.f32 %v1876_v42, %v1370_v37 }
 0x7d0   : > { %v1379_v44 = vmul.f32 %v2307_v14, %v1378_v43 }
 0x7d2   : > { %v1380_v46 = vadd.f32 %v2309_v16, %v1379_v44 }
 0x7d4   : > { %v1381_v47 = vpack.c.bf16 %v1380_v46, %v1380_v46 }
 0x7d6   : > { %1721 = vmatmul.mubr.msk.bf16.vlgmr.msra.gmra.mxu1 %vm630_vm0, %v1381_v47 }
 0x896   : > { %v1434_v50 = vpop.f32.mrf.mxu1 }
 0x897   : > { %v1435_v51 = vadd.f32 %v1619_v48, %v1434_v50 }
 0x898   : > { %v1722_v14 = vpop.f32.mrf.mxu1 }
 0x899   : > { %1440 = vst [vmem:[%s617_s2] sm:$0xff] %v1435_v51 }
 0x89a   : > { %v1437_v16 = vpop.f32.mrf.mxu1 }
 0x89b   : > { %1942 = shalt.err (!%p1939_p6)
}
 0x89c   : > { %s1943_s28 = scalar_lea.hbm %s2455_s4, 128  ;;  %s1947_s21 = scalar_lea.hbm %s2565_s3, 512 }
 0x89d   : > { %p1944_p5 = scmp.ne.s32.totalorder %s2455_s4, %s1943_s28  ;;  %p1948_p10 = scmp.lt.s32.totalorder %s2455_s4, %s2565_s3 }
 0x89e   : > { %p1949_p12 = scmp.lt.s32.totalorder %s1947_s21, %s1943_s28 }
 0x89f   : > { %p1945_p3 = pnand %p1944_p5, %p2567_p7 }
 0x8a0   : > { %p1950_p0 = por %p1949_p12, %p1948_p10 }
 0x8a1   : > { %p1946_p8 = pneg %p1945_p3 }
 0x8a3   : > { %p1951_p1 = pnand %p1950_p0, %p1946_p8 }
 0x8a5   : > { %1954 = shalt.err (!%p1951_p1)
}
 0x8a6   : > { %1732 = dma.vmem_to_hbm [thread:$0]  (%p2567_p7), %s2457_s18, 128, %s2455_s4, %s1442_s1   ;;  %v1723_v52 = vpop.f32.mrf.mxu1 }
 0x8a7 PF: > { %s2568_s29 = sld [smem:[#allocation19_spill]]  ;;  %p1749_p9 = scmp.ge.s32.totalorder %s2041_s22, 2 }
 0x8a8   : > { %s2569_s19 = sld [smem:[#allocation24_spill]] }
 0x8ad   : > { %s1469_s16 = sand.u32 1, %s2568_s29  }
 0x8ae   : > { %p2570_p11 = scmp.ne.s32.totalorder %s2569_s19, 0  ;;  %s1470_s26 = scalar_lea.sflag [#allocation12], %s1469_s16 }
 0x8b0   : > { %p1742_p13 = pnand %p1749_p9, %p2570_p11 }
 0x8b2   : > { %p1743_p2 = pneg %p1742_p13 }
 0x8b4   : > { %2008 = dma.done.wait (%p1743_p2), %s1470_s26, 128  }
 0x8b5   : > { %2010 = vsyncadd (%p1743_p2), %s1470_s26, 4294967168  ;;  %s34_s22 = sadd.s32 1, %s2041_s22   ;;  %s2571_s27 = sld [smem:[#allocation25_spill]] }
 0x8b6   : > { %p31_p4 = scmp.ge.s32.totalorder %s34_s22, 6   ;;  %s2572_s19 = sld [smem:[#allocation20_spill]] }
 0x8b7   : > { %s2573_s1 = sld [smem:[#allocation21_spill]]  ;;  %s2576_s29 = smov %s2017_s30 }
 0x8b8   : > { %s2574_s20 = sld [smem:[#allocation22_spill]]  ;;  %s2577_s30 = smov %s2021_s0 }
 0x8b9   : > { %s2575_s21 = sld [smem:[#allocation23_spill]]  ;;  %33 = sbr.rel (!%p31_p4) target bundleno = 16 (0x10), region = 167 }
 0x8bb   : > { %s2578_s0 = smov %s2571_s27 }
 0x8be   :  { %1475 = vsyncpa [#allocation11], 1 }
 0x8bf   :  { %1477 = vsyncpa [#allocation11 + $0x1], 1 }
 0x8c0   :  { %1478 = vsyncpa [#allocation14], 1 }
 0x8c1   :  { %1479 = vsyncpa [#allocation12], 1 }
 0x8c2   :  { %1481 = vsyncpa [#allocation12 + $0x1], 1 }

</bundles_post_ra>
